<compile_context>
chip_gen: v6e
topology: v6e:2x2x1
jax: 0.10.0
libtpu: 0.0.40
codegen_flags: <defaults>
</compile_context>

<pallas_src>
import functools

import jax
import jax.numpy as jnp
from jax.experimental import pallas as pl
from jax.experimental.pallas import tpu as pltpu

LANE = 128
SUBLANE = 8


def _round_up(x, m):
    return ((x + m - 1) // m) * m


# ----------------------------- Pallas kernel ---------------------------------

def _fused_packed_mlp_kernel(x_ref, w_ref, b_ref, o_ref, *, relu_flags):
    """Entire packed MLP for one batch tile.

    x_ref: (TB, F_pad)          activation tile (feature-padded to 128 lanes)
    w_ref: (L, F_pad, F_pad)    per-layer block-diagonal dense weights (zero padded)
    b_ref: (L, 1, F_pad)        per-layer bias (zero padded)
    o_ref: (TB, F_pad)          output tile (real outputs in the leading columns)
    """
    act = x_ref[...].astype(jnp.float32)
    # Static (unrolled) layer loop: L is tiny, activations stay in vregs/VMEM.
    for l, relu in enumerate(relu_flags):
        act = jnp.dot(act, w_ref[l], preferred_element_type=jnp.float32) + b_ref[l]
        if relu:
            act = jnp.maximum(act, 0.0)
    o_ref[...] = act.astype(o_ref.dtype)


# ----------------------------- Parameter packing ------------------------------

def pack_packed_mlp(params, dtype=jnp.float32):
    """Fold grouped (block-diagonal) layers into zero-padded dense tensors.

    Returns a dict with:
      W          : (L, F_pad, F_pad) block-diagonal dense weights
      b          : (L, 1, F_pad)     biases
      relu_flags : static tuple, ReLU after layer l?
      f_in, f_out, F_pad
    """
    layers = [params["input"]] + list(params["hidden"]) + [params["output"]]
    extents = []
    for w, _ in layers:
        G, in_g, out_g = w.shape
        extents += [G * in_g, G * out_g]
    F_pad = _round_up(max(extents), LANE)
    L = len(layers)

    W = jnp.zeros((L, F_pad, F_pad), dtype)
    Bv = jnp.zeros((L, 1, F_pad), dtype)
    for l, (w, b) in enumerate(layers):
        G, in_g, out_g = w.shape
        for g in range(G):  # one-time host-side packing, not in the kernel
            W = W.at[l, g * in_g:(g + 1) * in_g,
                     g * out_g:(g + 1) * out_g].set(w[g].astype(dtype))
        Bv = Bv.at[l, 0, :G * out_g].set(b.reshape(-1).astype(dtype))

    relu_flags = tuple([False] + [True] * len(params["hidden"]) + [False])
    f_in = layers[0][0].shape[0] * layers[0][0].shape[1]
    f_out = layers[-1][0].shape[0] * layers[-1][0].shape[2]
    return {"W": W, "b": Bv, "relu_flags": relu_flags,
            "f_in": f_in, "f_out": f_out, "F_pad": F_pad}


# ----------------------------- Forward wrapper ---------------------------------

def packed_mlp_forward(packed, x, *, tb=None):
    """Fused packed-MLP forward: one pallas_call over batch tiles."""
    W, Bv = packed["W"], packed["b"]
    relu_flags = packed["relu_flags"]
    f_in, f_out, F_pad = packed["f_in"], packed["f_out"], packed["F_pad"]
    L = W.shape[0]

    B = x.shape[0]
    assert x.shape[1] == f_in, (x.shape, f_in)

    # Batch tile: multiple of 8, large enough to amortize per-step overhead,
    # capped so big batches still give >=2 grid steps (keeps both v7x TCs busy).
    B_pad = _round_up(B, SUBLANE)
    if tb is None:
        tb = min(B_pad, 256)
    tb = _round_up(min(max(tb, SUBLANE), B_pad), SUBLANE)
    B_pad = _round_up(B_pad, tb)

    # Zero-pad input to lane-dense (B_pad, F_pad); padded rows/cols stay zero
    # through every layer (zero weights / zero bias in the padded region).
    x_pad = jnp.zeros((B_pad, F_pad), x.dtype).at[:B, :f_in].set(x)

    itemsize = jnp.dtype(x.dtype).itemsize
    cost = pl.CostEstimate(
        flops=2 * B_pad * L * F_pad * F_pad,
        transcendentals=0,
        bytes_accessed=(x_pad.size + W.size + Bv.size + B_pad * F_pad) * itemsize,
    )

    kernel = functools.partial(_fused_packed_mlp_kernel, relu_flags=relu_flags)
    out_pad = pl.pallas_call(
        kernel,
        out_shape=jax.ShapeDtypeStruct((B_pad, F_pad), x.dtype),
        grid_spec=pl.GridSpec(
            grid=(B_pad // tb,),
            in_specs=[
                pl.BlockSpec((tb, F_pad), lambda i: (i, 0)),          # x tile
                pl.BlockSpec((L, F_pad, F_pad), lambda i: (0, 0, 0)),  # all weights, resident
                pl.BlockSpec((L, 1, F_pad), lambda i: (0, 0, 0)),      # all biases, resident
            ],
            out_specs=pl.BlockSpec((tb, F_pad), lambda i: (i, 0)),
        ),
        compiler_params=pltpu.CompilerParams(
            dimension_semantics=("parallel",),
            vmem_limit_bytes=64 * 1024 * 1024,
        ),
        cost_estimate=cost,
    )(x_pad, W, Bv)

    return out_pad[:B, :f_out]


# ----------------------------- Model init (glue) --------------------------------

def init_packed_mlp(key, *, input_size, output_size, hidden_sizes,
                    M=4, alpha=2, gamma=1, dtype=jnp.float32):
    """Deterministic parameter init mirroring PackedMLP.__init__ shapes."""
    groups_rest = M * gamma

    def layer(key, ext_in, ext_out, groups):
        in_g, out_g = ext_in // groups, ext_out // groups
        kw, kb = jax.random.split(key)
        bound = 1.0 / jnp.sqrt(jnp.maximum(in_g, 1)).astype(dtype)
        w = jax.random.uniform(kw, (groups, in_g, out_g), dtype, -bound, bound)
        b = jax.random.uniform(kb, (groups, 1, out_g), dtype, -bound, bound)
        return w, b

    keys = jax.random.split(key, 1 + (len(hidden_sizes) - 1) + 1)
    params = {}
    # input layer (first=True): groups=1, ext_in=input_size, ext_out=hidden0*alpha
    params["input"] = layer(keys[0], input_size, hidden_sizes[0] * alpha, 1)
    # hidden layers: groups=M*gamma
    params["hidden"] = []
    for idx, (fi, fo) in enumerate(zip(hidden_sizes[:-1], hidden_sizes[1:])):
        params["hidden"].append(
            layer(keys[1 + idx], fi * alpha, fo * alpha, groups_rest))
    # output layer (last=True): ext_out=output_size*M, groups=M*gamma
    params["output"] = layer(keys[-1], hidden_sizes[-1] * alpha,
                             output_size * M, groups_rest)
    return params


# ----------------------------- Reference (pure JAX) ----------------------------

def _packed_linear_ref(x, w, b):
    G, in_g, out_g = w.shape
    xg = x.reshape(x.shape[0], G, in_g)
    y = jnp.einsum("bgi,gio->bgo", xg, w) + b.reshape(1, G, out_g)
    return y.reshape(x.shape[0], G * out_g)


def packed_mlp_ref(params, x):
    w, b = params["input"]
    out = _packed_linear_ref(x, w, b)
    for (w, b) in params["hidden"]:
        out = jnp.maximum(_packed_linear_ref(out, w, b), 0.0)
    w, b = params["output"]
    return _packed_linear_ref(out, w, b)


# ----------------------------------- main --------------------------------------

if __name__ == "__main__":
    # Small shapes consistent with PackedMLP(input_size=8, output_size=4,
    # hidden_sizes=(32, 32), M=4, alpha=2, gamma=1)
    B, INPUT, OUTPUT = 16, 8, 4
    HIDDEN = (32, 32)
    M, ALPHA, GAMMA = 4, 2, 1

    key = jax.random.PRNGKey(0)
    kx, kp = jax.random.split(key)
    x = jax.random.normal(kx, (B, INPUT), dtype=jnp.float32)
    params = init_packed_mlp(kp, input_size=INPUT, output_size=OUTPUT,
                             hidden_sizes=HIDDEN, M=M, alpha=ALPHA, gamma=GAMMA)

    packed = pack_packed_mlp(params)          # one-time host-side packing
    out = packed_mlp_forward(packed, x)
    out = jax.block_until_ready(out)

    ref = packed_mlp_ref(params, x)
    assert out.shape == (B, OUTPUT * M), out.shape
    assert jnp.allclose(out, ref, atol=1e-5, rtol=1e-5), \
        float(jnp.max(jnp.abs(out - ref)))

    print("KERNEL_OK")
</pallas_src>

<mosaic_0001>
module attributes {stable_mosaic.version = 11 : i64} {
  func.func @_fused_packed_mlp_kernel(%arg0: i32, %arg1: memref<16x128xf32, #tpu.memory_space<vmem>>, %arg2: memref<3x128x128xf32, #tpu.memory_space<vmem>>, %arg3: memref<3x1x128xf32, #tpu.memory_space<vmem>>, %arg4: memref<16x128xf32, #tpu.memory_space<vmem>>) attributes {dimension_semantics = [#tpu.dimension_semantics<parallel>], iteration_bounds = array<i64: 1>, scalar_prefetch = 0 : i64, scratch_operands = 0 : i64, tpu.core_type = #tpu.core_type<tc>, window_params = [{transform_indices = @transform_0, window_bounds = array<i64: 16, 128>}, {pipeline_mode = #tpu.pipeline_mode<synchronous>, transform_indices = @transform_1, window_bounds = array<i64: 3, 128, 128>}, {pipeline_mode = #tpu.pipeline_mode<synchronous>, transform_indices = @transform_2, window_bounds = array<i64: 3, 1, 128>}, {transform_indices = @transform_3, window_bounds = array<i64: 16, 128>}]} {
    %c0 = arith.constant 0 : index
    %c0_0 = arith.constant 0 : index
    %0 = vector.load %arg1[%c0, %c0_0] : memref<16x128xf32, #tpu.memory_space<vmem>>, vector<16x128xf32>
    %c0_1 = arith.constant 0 : index
    %c0_2 = arith.constant 0 : index
    %c0_3 = arith.constant 0 : index
    %1 = vector.load %arg2[%c0_1, %c0_2, %c0_3] : memref<3x128x128xf32, #tpu.memory_space<vmem>>, vector<1x128x128xf32>
    %2 = vector.shape_cast %1 : vector<1x128x128xf32> to vector<128x128xf32>
    %cst = arith.constant dense<0.000000e+00> : vector<16x128xf32>
    %3 = tpu.matmul %0, %2, %cst {dimension_numbers = #tpu.dot_dimension_numbers<[1], [0], [0], [1], [0, 0, 1, 1], [], []>} : vector<16x128xf32>, vector<128x128xf32>, vector<16x128xf32> -> vector<16x128xf32>
    %c0_4 = arith.constant 0 : index
    %c0_5 = arith.constant 0 : index
    %c0_6 = arith.constant 0 : index
    %4 = vector.load %arg3[%c0_4, %c0_5, %c0_6] : memref<3x1x128xf32, #tpu.memory_space<vmem>>, vector<1x1x128xf32>
    %5 = vector.shape_cast %4 : vector<1x1x128xf32> to vector<1x128xf32>
    %6 = vector.broadcast %5 : vector<1x128xf32> to vector<16x128xf32>
    %7 = arith.addf %3, %6 : vector<16x128xf32>
    %c1 = arith.constant 1 : index
    %c0_7 = arith.constant 0 : index
    %c0_8 = arith.constant 0 : index
    %8 = vector.load %arg2[%c1, %c0_7, %c0_8] : memref<3x128x128xf32, #tpu.memory_space<vmem>>, vector<1x128x128xf32>
    %9 = vector.shape_cast %8 : vector<1x128x128xf32> to vector<128x128xf32>
    %cst_9 = arith.constant dense<0.000000e+00> : vector<16x128xf32>
    %10 = tpu.matmul %7, %9, %cst_9 {dimension_numbers = #tpu.dot_dimension_numbers<[1], [0], [0], [1], [0, 0, 1, 1], [], []>} : vector<16x128xf32>, vector<128x128xf32>, vector<16x128xf32> -> vector<16x128xf32>
    %c1_10 = arith.constant 1 : index
    %c0_11 = arith.constant 0 : index
    %c0_12 = arith.constant 0 : index
    %11 = vector.load %arg3[%c1_10, %c0_11, %c0_12] : memref<3x1x128xf32, #tpu.memory_space<vmem>>, vector<1x1x128xf32>
    %12 = vector.shape_cast %11 : vector<1x1x128xf32> to vector<1x128xf32>
    %13 = vector.broadcast %12 : vector<1x128xf32> to vector<16x128xf32>
    %14 = arith.addf %10, %13 : vector<16x128xf32>
    %cst_13 = arith.constant 0.000000e+00 : f32
    %15 = vector.broadcast %cst_13 : f32 to vector<16x128xf32>
    %16 = arith.maximumf %14, %15 : vector<16x128xf32>
    %c2 = arith.constant 2 : index
    %c0_14 = arith.constant 0 : index
    %c0_15 = arith.constant 0 : index
    %17 = vector.load %arg2[%c2, %c0_14, %c0_15] : memref<3x128x128xf32, #tpu.memory_space<vmem>>, vector<1x128x128xf32>
    %18 = vector.shape_cast %17 : vector<1x128x128xf32> to vector<128x128xf32>
    %cst_16 = arith.constant dense<0.000000e+00> : vector<16x128xf32>
    %19 = tpu.matmul %16, %18, %cst_16 {dimension_numbers = #tpu.dot_dimension_numbers<[1], [0], [0], [1], [0, 0, 1, 1], [], []>} : vector<16x128xf32>, vector<128x128xf32>, vector<16x128xf32> -> vector<16x128xf32>
    %c2_17 = arith.constant 2 : index
    %c0_18 = arith.constant 0 : index
    %c0_19 = arith.constant 0 : index
    %20 = vector.load %arg3[%c2_17, %c0_18, %c0_19] : memref<3x1x128xf32, #tpu.memory_space<vmem>>, vector<1x1x128xf32>
    %21 = vector.shape_cast %20 : vector<1x1x128xf32> to vector<1x128xf32>
    %22 = vector.broadcast %21 : vector<1x128xf32> to vector<16x128xf32>
    %23 = arith.addf %19, %22 : vector<16x128xf32>
    %c0_20 = arith.constant 0 : index
    %c0_21 = arith.constant 0 : index
    %24 = vector.load %arg4[%c0_20, %c0_21] : memref<16x128xf32, #tpu.memory_space<vmem>>, vector<16x128xf32>
    tpu.vector_store %arg4[%c0_20, %c0_21], %23 {strides = array<i32>} : memref<16x128xf32, #tpu.memory_space<vmem>>, vector<16x128xf32>,
    return
  }
  func.func @transform_0(%arg0: i32) -> (i32, i32) {
    %c0_i32 = arith.constant 0 : i32
    %c0_i32_0 = arith.constant 0 : i32
    return %arg0, %c0_i32 : i32, i32
  }
  func.func @transform_1(%arg0: i32) -> (i32, i32, i32) {
    %c0_i32 = arith.constant 0 : i32
    %c0_i32_0 = arith.constant 0 : i32
    %c0_i32_1 = arith.constant 0 : i32
    %c0_i32_2 = arith.constant 0 : i32
    return %c0_i32, %c0_i32_0, %c0_i32_1 : i32, i32, i32
  }
  func.func @transform_2(%arg0: i32) -> (i32, i32, i32) {
    %c0_i32 = arith.constant 0 : i32
    %c0_i32_0 = arith.constant 0 : i32
    %c0_i32_1 = arith.constant 0 : i32
    %c0_i32_2 = arith.constant 0 : i32
    return %c0_i32, %c0_i32_0, %c0_i32_1 : i32, i32, i32
  }
  func.func @transform_3(%arg0: i32) -> (i32, i32) {
    %c0_i32 = arith.constant 0 : i32
    %c0_i32_0 = arith.constant 0 : i32
    return %arg0, %c0_i32 : i32, i32
  }
}

</mosaic_0001>

<bundles_post_ra>
// kernel: tpu_custom_call.1
= control target key start
LH: loop header
LB: loop body
LE: loop exit
PB: predicated region body
PF: predicated region fallthrough
CT: control target
= control target key end

     0   :  { %8 = vsyncpa [#allocation3], 0  ;;  %s652_s0 = inlined_call_operand.hbm [shape: f32[16,128], index: 0, kind: input, shape index: {}]   ;;  %s653_s1 = inlined_call_operand.hbm [shape: f32[3,128,128], index: 1, kind: input, shape index: {}]   ;;  %s654_s2 = inlined_call_operand.vmem [shape: f32[3,1,128], index: 2, kind: input, shape index: {}]   ;;  %s655_s3 = inlined_call_operand.hbm [shape: f32[16,128], index: 3, kind: output, shape index: {}]  }
   0x1   :  { %9 = vsyncpa [#allocation6], 0 }
   0x2   :  { %10 = vsyncpa [#allocation4], 0  ;;  %s600_s12 = smov [#allocation2]  }
   0x3   :  { %s16_s13 = sshll.u32 %s600_s12, 4  ;;  %s17_s13 = int_to_ptr.vmem [resolvable:$true] %s16_s13 }
   0x4   :  { %s542_s14 = scalar_lea.vmem %s17_s13, 256  ;;  %p547_p1 = scmp.lt.s32.totalorder %s17_s13, %s17_s13 }
   0x5   :  { %p543_p0 = scmp.ne.s32.totalorder %s17_s13, %s542_s14  ;;  %p548_p2 = scmp.lt.s32.totalorder %s542_s14, %s542_s14 }
   0x7   :  { %p549_p3 = por %p548_p2, %p547_p1 }
   0x9   :  { %p550_p4 = pnand %p549_p3, %p543_p0 }
   0xb   :  { %553 = shalt.err (!%p550_p4)
}
   0xc   :  { %s601_s15 = smov 128   ;;  %s602_s16 = smov 8  }
   0xd   :  { %22 = dma.hbm_to_vmem [thread:$0]  %s652_s0, 256, %s17_s13, [#allocation3], %s601_s15, %s601_s15, %s602_s16  }
   0xe   :  { %s603_s19 = smov [#allocation5]  }
   0xf   :  { %s28_s20 = sshll.u32 %s603_s19, 4  ;;  %s29_s20 = int_to_ptr.vmem [resolvable:$true] %s28_s20 }
  0x10   :  { %s562_s21 = scalar_lea.vmem %s29_s20, 6144  ;;  %p567_p6 = scmp.lt.s32.totalorder %s29_s20, %s29_s20 }
  0x11   :  { %p563_p5 = scmp.ne.s32.totalorder %s29_s20, %s562_s21  ;;  %p568_p7 = scmp.lt.s32.totalorder %s562_s21, %s562_s21 }
  0x13   :  { %p569_p8 = por %p568_p7, %p567_p6 }
  0x15   :  { %p570_p9 = pnand %p569_p8, %p563_p5 }
  0x17   :  { %573 = shalt.err (!%p570_p9)
}
  0x18   :  { %34 = dma.hbm_to_vmem [thread:$0]  %s653_s1, 6144, %s29_s20, [#allocation6], %s601_s15, %s601_s15, %s602_s16  }
  0x19   :  { %594 = dma.done.wait [#allocation3], 256  }
  0x1a   :  { %595 = vsyncadd [#allocation3], 4294967040 }
  0x1b   :  { %596 = dma.done.wait [#allocation6], 6144  }
  0x1c   :  { %597 = vsyncadd [#allocation6], 4294961152  ;;  %v60_v0 = vld [vmem:[#allocation5 + $0x78] sm:$0xff]  ;;  %v59_v1 = vld [vmem:[#allocation5 + $0x70] sm:$0xff]  ;;  %s604_s28 = smov [#allocation7]  }
  0x1d   :  { %424 = vmatprep.subr.mxu0 %v60_v0  ;;  %v58_v2 = vld [vmem:[#allocation5 + $0x68] sm:$0xff]  ;;  %v57_v3 = vld [vmem:[#allocation5 + $0x60] sm:$0xff]  ;;  %v43_v4 = vld [vmem:[#allocation2] sm:$0xff]  ;;  %s352_s29 = sshll.u32 %s604_s28, 4  ;;  %s353_s29 = int_to_ptr.vmem [resolvable:$true] %s352_s29 }
  0x1e   :  { %425 = vmatpush3.msra.mxu0 %v60_v0  ;;  %v56_v5 = vld [vmem:[#allocation5 + $0x58] sm:$0xff]  ;;  %456 = vmatprep.mubr.f32.mxu0 %v43_v4  ;;  %v158_v7 = vld [vmem:[#allocation5 + $0xf0] sm:$0xff]  ;;  %v157_v9 = vld [vmem:[#allocation5 + $0xe8] sm:$0xff]  ;;  %s574_s30 = scalar_lea.vmem %s353_s29, 256  ;;  %p579_p11 = scmp.lt.s32.totalorder %s353_s29, %s353_s29 }
  0x1f   :  { %426 = vmatprep.subr.mxu0 %v59_v1  ;;  %v159_v6 = vld [vmem:[#allocation5 + $0xf8] sm:$0xff]  ;;  %v55_v8 = vld [vmem:[#allocation5 + $0x50] sm:$0xff]  ;;  %v54_v10 = vld [vmem:[#allocation5 + $0x48] sm:$0xff]  ;;  %p575_p10 = scmp.ne.s32.totalorder %s353_s29, %s574_s30  ;;  %p580_p12 = scmp.lt.s32.totalorder %s574_s30, %s574_s30 }
  0x20   :  { %427 = vmatpush3.msra.mxu0 %v59_v1  ;;  %459 = vmatprep.subr.mxu1 %v159_v6  ;;  %v156_v11 = vld [vmem:[#allocation5 + $0xe0] sm:$0xff]  ;;  %v155_v13 = vld [vmem:[#allocation5 + $0xd8] sm:$0xff]  ;;  %v154_v15 = vld [vmem:[#allocation5 + $0xd0] sm:$0xff] }
  0x21   :  { %428 = vmatprep.subr.mxu0 %v58_v2  ;;  %460 = vmatpush3.msra.mxu1 %v159_v6  ;;  %v53_v12 = vld [vmem:[#allocation5 + $0x40] sm:$0xff]  ;;  %v52_v14 = vld [vmem:[#allocation5 + $0x38] sm:$0xff]  ;;  %v51_v16 = vld [vmem:[#allocation5 + $0x30] sm:$0xff]  ;;  %p581_p13 = por %p580_p12, %p579_p11 }
  0x22   :  { %429 = vmatpush3.msra.mxu0 %v58_v2  ;;  %461 = vmatprep.subr.mxu1 %v158_v7  ;;  %v153_v17 = vld [vmem:[#allocation5 + $0xc8] sm:$0xff]  ;;  %v152_v19 = vld [vmem:[#allocation5 + $0xc0] sm:$0xff]  ;;  %v151_v21 = vld [vmem:[#allocation5 + $0xb8] sm:$0xff] }
  0x23   :  { %430 = vmatprep.subr.mxu0 %v57_v3  ;;  %462 = vmatpush3.msra.mxu1 %v158_v7  ;;  %v50_v18 = vld [vmem:[#allocation5 + $0x28] sm:$0xff]  ;;  %v49_v20 = vld [vmem:[#allocation5 + $0x20] sm:$0xff]  ;;  %v48_v22 = vld [vmem:[#allocation5 + $0x18] sm:$0xff]  ;;  %p582_p0 = pnand %p581_p13, %p575_p10 }
  0x24   :  { %431 = vmatpush3.msra.mxu0 %v57_v3  ;;  %463 = vmatprep.subr.mxu1 %v157_v9  ;;  %v150_v23 = vld [vmem:[#allocation5 + $0xb0] sm:$0xff]  ;;  %v149_v25 = vld [vmem:[#allocation5 + $0xa8] sm:$0xff]  ;;  %v148_v27 = vld [vmem:[#allocation5 + $0xa0] sm:$0xff] }
  0x25   :  { %432 = vmatprep.subr.mxu0 %v56_v5  ;;  %464 = vmatpush3.msra.mxu1 %v157_v9  ;;  %v47_v24 = vld [vmem:[#allocation5 + $0x10] sm:$0xff]  ;;  %v46_v26 = vld [vmem:[#allocation5 + $0x8] sm:$0xff]  ;;  %v45_v28 = vld [vmem:[#allocation5] sm:$0xff] }
  0x26   :  { %433 = vmatpush3.msra.mxu0 %v56_v5  ;;  %465 = vmatprep.subr.mxu1 %v156_v11  ;;  %v147_v29 = vld [vmem:[#allocation5 + $0x98] sm:$0xff]  ;;  %v146_v31 = vld [vmem:[#allocation5 + $0x90] sm:$0xff]  ;;  %v145_v32 = vld [vmem:[#allocation5 + $0x88] sm:$0xff] }
  0x27   :  { %434 = vmatprep.subr.mxu0 %v55_v8  ;;  %466 = vmatpush3.msra.mxu1 %v156_v11  ;;  %v44_v30 = vld [vmem:[#allocation2 + $0x8] sm:$0xff]  ;;  %v144_v33 = vld [vmem:[#allocation5 + $0x80] sm:$0xff]  ;;  %v260_v35 = vld [vmem:[#allocation5 + $0x170] sm:$0xff] }
  0x28   :  { %435 = vmatpush3.msra.mxu0 %v55_v8  ;;  %467 = vmatprep.subr.mxu1 %v155_v13  ;;  %v261_v34 = vld [vmem:[#allocation5 + $0x178] sm:$0xff]  ;;  %v259_v36 = vld [vmem:[#allocation5 + $0x168] sm:$0xff]  ;;  %v258_v37 = vld [vmem:[#allocation5 + $0x160] sm:$0xff] }
  0x29   :  { %436 = vmatprep.subr.mxu0 %v54_v10  ;;  %468 = vmatpush3.msra.mxu1 %v155_v13  ;;  %v257_v38 = vld [vmem:[#allocation5 + $0x158] sm:$0xff]  ;;  %v256_v39 = vld [vmem:[#allocation5 + $0x150] sm:$0xff]  ;;  %v255_v40 = vld [vmem:[#allocation5 + $0x148] sm:$0xff] }
  0x2a   :  { %437 = vmatpush3.msra.mxu0 %v54_v10  ;;  %469 = vmatprep.subr.mxu1 %v154_v15  ;;  %v254_v41 = vld [vmem:[#allocation5 + $0x140] sm:$0xff]  ;;  %v253_v42 = vld [vmem:[#allocation5 + $0x138] sm:$0xff]  ;;  %v252_v43 = vld [vmem:[#allocation5 + $0x130] sm:$0xff] }
  0x2b   :  { %438 = vmatprep.subr.mxu0 %v53_v12  ;;  %470 = vmatpush3.msra.mxu1 %v154_v15  ;;  %v251_v44 = vld [vmem:[#allocation5 + $0x128] sm:$0xff]  ;;  %v250_v45 = vld [vmem:[#allocation5 + $0x120] sm:$0xff]  ;;  %v365_v47 = vld [vmem:[%s654_s2] ss:$0 sm:$0xff] }
  0x2c   :  { %439 = vmatpush3.msra.mxu0 %v53_v12  ;;  %471 = vmatprep.subr.mxu1 %v153_v17  ;;  %v249_v51 = vld [vmem:[#allocation5 + $0x118] sm:$0xff]  ;;  %v248_v52 = vld [vmem:[#allocation5 + $0x110] sm:$0xff]  ;;  %v247_v53 = vld [vmem:[#allocation5 + $0x108] sm:$0xff] }
  0x2d   :  { %440 = vmatprep.subr.mxu0 %v52_v14  ;;  %472 = vmatpush3.msra.mxu1 %v153_v17  ;;  %v246_v54 = vld [vmem:[#allocation5 + $0x100] sm:$0xff]  ;;  %v367_v55 = vld [vmem:[%s654_s2 + $0x1] ss:$0 sm:$0xff]  ;;  %v369_v62 = vld [vmem:[%s654_s2 + $0x2] ss:$0 sm:$0xff] }
  0x2e   :  { %441 = vmatpush3.msra.mxu0 %v52_v14  ;;  %473 = vmatprep.subr.mxu1 %v152_v19 }
  0x2f   :  { %442 = vmatprep.subr.mxu0 %v51_v16  ;;  %474 = vmatpush3.msra.mxu1 %v152_v19 }
  0x30   :  { %443 = vmatpush3.msra.mxu0 %v51_v16  ;;  %475 = vmatprep.subr.mxu1 %v151_v21 }
  0x31   :  { %444 = vmatprep.subr.mxu0 %v50_v18  ;;  %476 = vmatpush3.msra.mxu1 %v151_v21 }
  0x32   :  { %445 = vmatpush3.msra.mxu0 %v50_v18  ;;  %477 = vmatprep.subr.mxu1 %v150_v23 }
  0x33   :  { %446 = vmatprep.subr.mxu0 %v49_v20  ;;  %478 = vmatpush3.msra.mxu1 %v150_v23 }
  0x34   :  { %447 = vmatpush3.msra.mxu0 %v49_v20  ;;  %479 = vmatprep.subr.mxu1 %v149_v25 }
  0x35   :  { %448 = vmatprep.subr.mxu0 %v48_v22  ;;  %480 = vmatpush3.msra.mxu1 %v149_v25 }
  0x36   :  { %449 = vmatpush3.msra.mxu0 %v48_v22  ;;  %481 = vmatprep.subr.mxu1 %v148_v27 }
  0x37   :  { %450 = vmatprep.subr.mxu0 %v47_v24  ;;  %482 = vmatpush3.msra.mxu1 %v148_v27 }
  0x38   :  { %451 = vmatpush3.msra.mxu0 %v47_v24  ;;  %483 = vmatprep.subr.mxu1 %v147_v29 }
  0x39   :  { %452 = vmatprep.subr.mxu0 %v46_v26  ;;  %484 = vmatpush3.msra.mxu1 %v147_v29 }
  0x3a   :  { %453 = vmatpush3.msra.mxu0 %v46_v26  ;;  %485 = vmatprep.subr.mxu1 %v146_v31 }
  0x3b   :  { %454 = vmatprep.subr.mxu0 %v45_v28  ;;  %486 = vmatpush3.msra.mxu1 %v146_v31 }
  0x3c   :  { %455 = vmatpush3.msra.mxu0 %v45_v28  ;;  %487 = vmatprep.subr.mxu1 %v145_v32 }
  0x3d   :  { %457 = vmatmul.mubr.f32.vlgmr.msra.gmra.mxu0 %v44_v30  ;;  %488 = vmatpush3.msra.mxu1 %v145_v32 }
  0x3e   :  { %489 = vmatprep.subr.mxu1 %v144_v33  ;;  %494 = vmatprep.subr.mxu0 %v261_v34 }
  0x3f   :  { %490 = vmatpush3.msra.mxu1 %v144_v33  ;;  %495 = vmatpush3.msra.mxu0 %v261_v34 }
  0x40   :  { %496 = vmatprep.subr.mxu0 %v260_v35 }
  0x41   :  { %497 = vmatpush3.msra.mxu0 %v260_v35 }
  0x42   :  { %498 = vmatprep.subr.mxu0 %v259_v36 }
  0x43   :  { %499 = vmatpush3.msra.mxu0 %v259_v36 }
  0x44   :  { %500 = vmatprep.subr.mxu0 %v258_v37 }
  0x45   :  { %501 = vmatpush3.msra.mxu0 %v258_v37 }
  0x46   :  { %502 = vmatprep.subr.mxu0 %v257_v38 }
  0x47   :  { %503 = vmatpush3.msra.mxu0 %v257_v38 }
  0x48   :  { %504 = vmatprep.subr.mxu0 %v256_v39 }
  0x49   :  { %505 = vmatpush3.msra.mxu0 %v256_v39 }
  0x4a   :  { %506 = vmatprep.subr.mxu0 %v255_v40 }
  0x4b   :  { %507 = vmatpush3.msra.mxu0 %v255_v40 }
  0x4c   :  { %508 = vmatprep.subr.mxu0 %v254_v41 }
  0x4d   :  { %509 = vmatpush3.msra.mxu0 %v254_v41 }
  0x4e   :  { %510 = vmatprep.subr.mxu0 %v253_v42 }
  0x4f   :  { %511 = vmatpush3.msra.mxu0 %v253_v42 }
  0x50   :  { %512 = vmatprep.subr.mxu0 %v252_v43 }
  0x51   :  { %513 = vmatpush3.msra.mxu0 %v252_v43 }
  0x52   :  { %514 = vmatprep.subr.mxu0 %v251_v44 }
  0x53   :  { %515 = vmatpush3.msra.mxu0 %v251_v44 }
  0x54   :  { %516 = vmatprep.subr.mxu0 %v250_v45 }
  0x55   :  { %517 = vmatpush3.msra.mxu0 %v250_v45 }
  0x56   :  { %518 = vmatprep.subr.mxu0 %v249_v51 }
  0x57   :  { %519 = vmatpush3.msra.mxu0 %v249_v51 }
  0x58   :  { %520 = vmatprep.subr.mxu0 %v248_v52 }
  0x59   :  { %521 = vmatpush3.msra.mxu0 %v248_v52 }
  0x5a   :  { %522 = vmatprep.subr.mxu0 %v247_v53 }
  0x5b   :  { %523 = vmatpush3.msra.mxu0 %v247_v53 }
  0x5c   :  { %524 = vmatprep.subr.mxu0 %v246_v54 }
  0x5d   :  { %525 = vmatpush3.msra.mxu0 %v246_v54 }
  0xfd   :  { %v458_v46 = vpop.f32.mrf.mxu0 }
  0xfe   :  { %v140_v50 = vadd.f32 %v458_v46, %v365_v47 }
  0xff   :  { %v134_v48 = vpop.f32.mrf.mxu0 }
 0x100   :  { %v135_v49 = vadd.f32 %v365_v47, %v134_v48 }
 0x102   :  { %491 = vmatprep.mubr.f32.mxu1 %v135_v49 }
 0x103   :  { %492 = vmatmul.mubr.f32.vlgmr.msra.gmra.mxu1 %v140_v50 }
 0x1c3   :  { %v493_v56 = vpop.f32.mrf.mxu1 }
 0x1c4   :  { %v240_v57 = vadd.f32 %v493_v56, %v367_v55 }
 0x1c5   :  { %v234_v58 = vpop.f32.mrf.mxu1 }
 0x1c6   :  { %v235_v59 = vadd.f32 %v367_v55, %v234_v58  ;;  %v244_v61 = vmax.f32 %v240_v57, 0.0 }
 0x1c8   :  { %v243_v60 = vmax.f32 %v235_v59, 0.0 }
 0x1ca   :  { %526 = vmatprep.mubr.f32.mxu0 %v243_v60 }
 0x1cb   :  { %527 = vmatmul.mubr.f32.vlgmr.msra.gmra.mxu0 %v244_v61 }
 0x28b   :  { %v528_v63 = vpop.f32.mrf.mxu0 }
 0x28c   :  { %v342_v0 = vadd.f32 %v528_v63, %v369_v62 }
 0x28d   :  { %v336_v1 = vpop.f32.mrf.mxu0 }
 0x28e   :  { %346 = vst [vmem:[#allocation7 + $0x8] sm:$0xff] %v342_v0  ;;  %v337_v2 = vadd.f32 %v369_v62, %v336_v1 }
 0x290   :  { %345 = vst [vmem:[#allocation7] sm:$0xff] %v337_v2 }
 0x291   :  { %585 = shalt.err (!%p582_p0)
}
 0x292   :  { %358 = dma.vmem_to_hbm [thread:$0]  %s353_s29, 256, %s655_s3, [#allocation4], %s601_s15, %s601_s15, %s602_s16  }
 0x293   :  { %598 = dma.done.wait [#allocation4], 256  }
 0x294   :  { %599 = vsyncadd [#allocation4], 4294967040 }
 0x295   :  { %362 = vsyncpa [#allocation3], 1 }
 0x296   :  { %363 = vsyncpa [#allocation6], 1 }
 0x297   :  { %364 = vsyncpa [#allocation4], 1 }

</bundles_post_ra>
